<compile_context>
chip_gen: v7x
topology: tpu7x:2x2x1
jax: 0.10.0
libtpu: 0.0.40
codegen_flags: <defaults>
</compile_context>

<pallas_src>
import jax
import jax.numpy as jnp
from jax import lax
from jax.experimental import pallas as pl
from jax.experimental.pallas import tpu as pltpu


def _round_up(x, m):
    return ((x + m - 1) // m) * m


# --------------------------------- kernel ----------------------------------

def _mix_loss_kernel(nb_ref,                                   # scalar prefetch: (1,) int32, true B
                     x_conv_ref, x_pred_conv_ref,
                     x_trans_ref, x_pred_trans_ref,
                     labels_ref,
                     conv_ct_ref, trans_ct_ref,                # centers pre-transposed (D, C)
                     conv_csq_ref, trans_csq_ref,              # precomputed ||center||^2 (1, C) f32
                     out_ref,                                  # SMEM (1,) f32 output
                     acc_ref):                                 # SMEM (1,) f32 scratch accumulator
    i = pl.program_id(0)
    tb = x_conv_ref.shape[0]
    n_valid = nb_ref[0]

    labels = labels_ref[...].astype(jnp.float32)               # (tb, C)

    # Row-validity mask (handles the zero-padded tail block exactly).
    row_ids = i * tb + lax.broadcasted_iota(jnp.int32, (tb, 1), 0)
    valid = (row_ids < n_valid).astype(jnp.float32)             # (tb, 1)

    # ---- SoftTargetCrossEntropy: per-row  rowsum(t)*(m+lse) - sum_c t*p ----
    # (equivalent to sum_c -t * log_softmax(p); avoids forming the full logp)
    def ce_sum(pred):
        p = pred.astype(jnp.float32)
        m = jnp.max(p, axis=-1, keepdims=True)                               # (tb, 1)
        lse = jnp.log(jnp.sum(jnp.exp(p - m), axis=-1, keepdims=True))       # (tb, 1)
        t_sum = jnp.sum(labels, axis=-1, keepdims=True)                      # (tb, 1)
        t_dot = jnp.sum(labels * p, axis=-1, keepdims=True)                  # (tb, 1)
        return jnp.sum((t_sum * (m + lse) - t_dot) * valid)

    # ------------------- CenterLoss (sum over block rows) -------------------
    def center_sum(x_ref, ct_ref, csq_ref):
        x = x_ref[...]                                                       # (tb, D)
        xf = x.astype(jnp.float32)
        x_sq = jnp.sum(xf * xf, axis=-1, keepdims=True)                      # (tb, 1)
        # MXU matmul in the input dtype, f32 accumulation; centers arrive
        # already transposed so there is no in-kernel XLU transpose.
        xc = jnp.dot(x, ct_ref[...], preferred_element_type=jnp.float32)     # (tb, C)
        distmat = x_sq + csq_ref[...] - 2.0 * xc
        dist = jnp.clip(distmat * labels, 1e-12, 1e12)                       # torch clamp semantics
        return jnp.sum(jnp.sum(dist, axis=-1, keepdims=True) * valid)

    step = (ce_sum(x_pred_conv_ref[...]) + ce_sum(x_pred_trans_ref[...])
            + 0.001 * center_sum(x_conv_ref, conv_ct_ref, conv_csq_ref)
            + 0.001 * center_sum(x_trans_ref, trans_ct_ref, trans_csq_ref))

    @pl.when(i == 0)
    def _():
        acc_ref[0] = jnp.float32(0.0)

    acc_ref[0] += step

    @pl.when(i == pl.num_programs(0) - 1)
    def _():
        out_ref[0] = acc_ref[0] / n_valid.astype(jnp.float32)


# -------------------------------- wrapper ----------------------------------

def mix_loss(x_conv, x_pred_conv, x_trans, x_pred_trans, labels,
             conv_centers, trans_centers, *, block_b=256):
    B, C = x_pred_conv.shape
    Dc = x_conv.shape[1]
    Dt = x_trans.shape[1]

    # Batch tile: multiple of 8 sublanes, capped so per-step VMEM stays small
    # (a few (tb, C) f32 temporaries per head -> safe for v7x's 64 MiB VMEM).
    tb = min(block_b, _round_up(B, 8))
    Bp = _round_up(B, tb)

    def pad_b(a):
        if a.shape[0] == Bp:
            return a
        return jnp.pad(a, ((0, Bp - a.shape[0]), (0, 0)))

    x_conv_p = pad_b(x_conv)
    x_pred_conv_p = pad_b(x_pred_conv)
    x_trans_p = pad_b(x_trans)
    x_pred_trans_p = pad_b(x_pred_trans)
    labels_p = pad_b(labels)

    # Parameter-only precomputation (kept out of the kernel).
    conv_ct = conv_centers.T                                                 # (Dc, C)
    trans_ct = trans_centers.T                                               # (Dt, C)
    conv_csq = jnp.sum(conv_centers.astype(jnp.float32) ** 2, axis=1)[None, :]   # (1, C)
    trans_csq = jnp.sum(trans_centers.astype(jnp.float32) ** 2, axis=1)[None, :]  # (1, C)

    nb = jnp.array([B], dtype=jnp.int32)
    grid = (Bp // tb,)

    def batch_spec(dim):
        return pl.BlockSpec((tb, dim), lambda i, nb_ref: (i, 0))

    def resident_spec(a):
        # Constant index_map -> fetched once, stays VMEM-resident across the grid.
        return pl.BlockSpec(a.shape, lambda i, nb_ref: (0, 0))

    out = pl.pallas_call(
        _mix_loss_kernel,
        out_shape=jax.ShapeDtypeStruct((1,), jnp.float32),
        grid_spec=pltpu.PrefetchScalarGridSpec(
            num_scalar_prefetch=1,
            grid=grid,
            in_specs=[
                batch_spec(Dc), batch_spec(C),
                batch_spec(Dt), batch_spec(C),
                batch_spec(C),
                resident_spec(conv_ct), resident_spec(trans_ct),
                resident_spec(conv_csq), resident_spec(trans_csq),
            ],
            out_specs=pl.BlockSpec(memory_space=pltpu.MemorySpace.SMEM),
            scratch_shapes=[pltpu.SMEM((1,), jnp.float32)],
        ),
        compiler_params=pltpu.CompilerParams(
            dimension_semantics=("arbitrary",)),
    )(nb, x_conv_p, x_pred_conv_p, x_trans_p, x_pred_trans_p, labels_p,
      conv_ct, trans_ct, conv_csq, trans_csq)
    return out[0]


# ------------------------- plain-JAX reference -----------------------------

def ref_mix_loss(x_conv, x_pred_conv, x_trans, x_pred_trans, labels,
                 conv_centers, trans_centers):
    labels = labels.astype(jnp.float32)
    B = x_conv.shape[0]

    def ce(pred):
        logp = jax.nn.log_softmax(pred.astype(jnp.float32), axis=-1)
        return jnp.sum(-labels * logp) / B

    def center(x, centers):
        x = x.astype(jnp.float32)
        centers = centers.astype(jnp.float32)
        d = (jnp.sum(x * x, 1, keepdims=True)
             + jnp.sum(centers * centers, 1)[None, :]
             - 2.0 * x @ centers.T)
        return jnp.sum(jnp.clip(d * labels, 1e-12, 1e12)) / B

    return (ce(x_pred_conv) + 0.001 * center(x_conv, conv_centers)
            + ce(x_pred_trans) + 0.001 * center(x_trans, trans_centers))


# ---------------------------------- main -----------------------------------

if __name__ == "__main__":
    B, C = 8, 10               # batch, num_classes
    Dc, Dt = 16, 8             # conv_feat_dim, trans_feat_dim

    key = jax.random.PRNGKey(0)
    k = jax.random.split(key, 7)

    x_conv       = jax.random.normal(k[0], (B, Dc), dtype=jnp.float32)
    x_pred_conv  = jax.random.normal(k[1], (B, C),  dtype=jnp.float32)
    x_trans      = jax.random.normal(k[2], (B, Dt), dtype=jnp.float32)
    x_pred_trans = jax.random.normal(k[3], (B, C),  dtype=jnp.float32)
    # soft target labels (B, C) — used both for cross-entropy and as the
    # CenterLoss mask (the torch code does `mask = labels` directly).
    labels = jax.nn.softmax(jax.random.normal(k[4], (B, C), dtype=jnp.float32), axis=-1)

    # deterministic "parameter" init (mirrors torch.randn(num_classes, feat_dim))
    conv_centers  = jax.random.normal(k[5], (C, Dc), dtype=jnp.float32)
    trans_centers = jax.random.normal(k[6], (C, Dt), dtype=jnp.float32)

    out = mix_loss(x_conv, x_pred_conv, x_trans, x_pred_trans, labels,
                   conv_centers, trans_centers)
    out = jax.block_until_ready(out)

    ref = ref_mix_loss(x_conv, x_pred_conv, x_trans, x_pred_trans, labels,
                       conv_centers, trans_centers)
    assert jnp.allclose(out, ref, rtol=1e-5, atol=1e-5), (out, ref)

    print("KERNEL_OK")
</pallas_src>

<mosaic_0001>
module attributes {stable_mosaic.version = 11 : i64} {
  func.func @_mix_loss_kernel(%arg0: i32, %arg1: memref<1xi32, #tpu.memory_space<smem>>, %arg2: memref<8x16xf32, #tpu.memory_space<vmem>>, %arg3: memref<8x10xf32, #tpu.memory_space<vmem>>, %arg4: memref<8x8xf32, #tpu.memory_space<vmem>>, %arg5: memref<8x10xf32, #tpu.memory_space<vmem>>, %arg6: memref<8x10xf32, #tpu.memory_space<vmem>>, %arg7: memref<16x10xf32, #tpu.memory_space<vmem>>, %arg8: memref<8x10xf32, #tpu.memory_space<vmem>>, %arg9: memref<1x10xf32, #tpu.memory_space<vmem>>, %arg10: memref<1x10xf32, #tpu.memory_space<vmem>>, %arg11: memref<1xf32, #tpu.memory_space<smem>>, %arg12: memref<1xf32, #tpu.memory_space<smem>>) attributes {dimension_semantics = [#tpu.dimension_semantics<arbitrary>], iteration_bounds = array<i64: 1>, scalar_prefetch = 1 : i64, scratch_operands = 1 : i64, tpu.core_type = #tpu.core_type<tc>, window_params = [{transform_indices = @transform_0, window_bounds = array<i64: 8, 16>}, {transform_indices = @transform_1, window_bounds = array<i64: 8, 10>}, {transform_indices = @transform_2, window_bounds = array<i64: 8, 8>}, {transform_indices = @transform_3, window_bounds = array<i64: 8, 10>}, {transform_indices = @transform_4, window_bounds = array<i64: 8, 10>}, {pipeline_mode = #tpu.pipeline_mode<synchronous>, transform_indices = @transform_5, window_bounds = array<i64: 16, 10>}, {pipeline_mode = #tpu.pipeline_mode<synchronous>, transform_indices = @transform_6, window_bounds = array<i64: 8, 10>}, {pipeline_mode = #tpu.pipeline_mode<synchronous>, transform_indices = @transform_7, window_bounds = array<i64: 1, 10>}, {pipeline_mode = #tpu.pipeline_mode<synchronous>, transform_indices = @transform_8, window_bounds = array<i64: 1, 10>}, {transform_indices = @transform_9, window_bounds = array<i64: 1>}]} {
    %c0 = arith.constant 0 : index
    %0 = memref.load %arg1[%c0] : memref<1xi32, #tpu.memory_space<smem>>
    %c0_0 = arith.constant 0 : index
    %c0_1 = arith.constant 0 : index
    %1 = vector.load %arg6[%c0_0, %c0_1] : memref<8x10xf32, #tpu.memory_space<vmem>>, vector<8x10xf32>
    %c8_i32 = arith.constant 8 : i32
    %2 = arith.muli %arg0, %c8_i32 : i32
    %3 = tpu.iota {dimensions = array<i32: 0>} : vector<8x1xi32>
    %4 = vector.broadcast %2 : i32 to vector<8x1xi32>
    %5 = arith.addi %4, %3 : vector<8x1xi32>
    %6 = vector.broadcast %0 : i32 to vector<8x1xi32>
    %7 = arith.cmpi slt, %5, %6 : vector<8x1xi32>
    %8 = arith.extui %7 : vector<8x1xi1> to vector<8x1xi32>
    %9 = arith.sitofp %8 : vector<8x1xi32> to vector<8x1xf32>
    %c0_2 = arith.constant 0 : index
    %c0_3 = arith.constant 0 : index
    %10 = vector.load %arg3[%c0_2, %c0_3] : memref<8x10xf32, #tpu.memory_space<vmem>>, vector<8x10xf32>
    %cst = arith.constant dense<0xFF800000> : vector<8xf32>
    %11 = vector.multi_reduction <maximumf>, %10, %cst [1] : vector<8x10xf32> to vector<8xf32>
    %12 = vector.shape_cast %11 : vector<8xf32> to vector<8x1xf32>
    %13 = vector.broadcast %12 : vector<8x1xf32> to vector<8x10xf32>
    %14 = arith.subf %10, %13 : vector<8x10xf32>
    %15 = math.exp %14 : vector<8x10xf32>
    %cst_4 = arith.constant dense<0.000000e+00> : vector<8xf32>
    %16 = vector.multi_reduction <add>, %15, %cst_4 [1] : vector<8x10xf32> to vector<8xf32>
    %17 = vector.shape_cast %16 : vector<8xf32> to vector<8x1xf32>
    %18 = math.log %17 : vector<8x1xf32>
    %cst_5 = arith.constant dense<0.000000e+00> : vector<8xf32>
    %19 = vector.multi_reduction <add>, %1, %cst_5 [1] : vector<8x10xf32> to vector<8xf32>
    %20 = vector.shape_cast %19 : vector<8xf32> to vector<8x1xf32>
    %21 = arith.mulf %1, %10 : vector<8x10xf32>
    %cst_6 = arith.constant dense<0.000000e+00> : vector<8xf32>
    %22 = vector.multi_reduction <add>, %21, %cst_6 [1] : vector<8x10xf32> to vector<8xf32>
    %23 = vector.shape_cast %22 : vector<8xf32> to vector<8x1xf32>
    %24 = arith.addf %12, %18 : vector<8x1xf32>
    %25 = arith.mulf %20, %24 : vector<8x1xf32>
    %26 = arith.subf %25, %23 : vector<8x1xf32>
    %27 = arith.mulf %26, %9 : vector<8x1xf32>
    %28 = vector.shape_cast %27 : vector<8x1xf32> to vector<1x8x1xf32>
    %cst_7 = arith.constant dense<0.000000e+00> : vector<1xf32>
    %29 = vector.multi_reduction <add>, %28, %cst_7 [1, 2] : vector<1x8x1xf32> to vector<1xf32>
    %30 = vector.shape_cast %29 : vector<1xf32> to vector<1x1x1xf32>
    %31 = vector.extract %30[0, 0, 0] : f32 from vector<1x1x1xf32>
    %c0_8 = arith.constant 0 : index
    %c0_9 = arith.constant 0 : index
    %32 = vector.load %arg5[%c0_8, %c0_9] : memref<8x10xf32, #tpu.memory_space<vmem>>, vector<8x10xf32>
    %cst_10 = arith.constant dense<0xFF800000> : vector<8xf32>
    %33 = vector.multi_reduction <maximumf>, %32, %cst_10 [1] : vector<8x10xf32> to vector<8xf32>
    %34 = vector.shape_cast %33 : vector<8xf32> to vector<8x1xf32>
    %35 = vector.broadcast %34 : vector<8x1xf32> to vector<8x10xf32>
    %36 = arith.subf %32, %35 : vector<8x10xf32>
    %37 = math.exp %36 : vector<8x10xf32>
    %cst_11 = arith.constant dense<0.000000e+00> : vector<8xf32>
    %38 = vector.multi_reduction <add>, %37, %cst_11 [1] : vector<8x10xf32> to vector<8xf32>
    %39 = vector.shape_cast %38 : vector<8xf32> to vector<8x1xf32>
    %40 = math.log %39 : vector<8x1xf32>
    %cst_12 = arith.constant dense<0.000000e+00> : vector<8xf32>
    %41 = vector.multi_reduction <add>, %1, %cst_12 [1] : vector<8x10xf32> to vector<8xf32>
    %42 = vector.shape_cast %41 : vector<8xf32> to vector<8x1xf32>
    %43 = arith.mulf %1, %32 : vector<8x10xf32>
    %cst_13 = arith.constant dense<0.000000e+00> : vector<8xf32>
    %44 = vector.multi_reduction <add>, %43, %cst_13 [1] : vector<8x10xf32> to vector<8xf32>
    %45 = vector.shape_cast %44 : vector<8xf32> to vector<8x1xf32>
    %46 = arith.addf %34, %40 : vector<8x1xf32>
    %47 = arith.mulf %42, %46 : vector<8x1xf32>
    %48 = arith.subf %47, %45 : vector<8x1xf32>
    %49 = arith.mulf %48, %9 : vector<8x1xf32>
    %50 = vector.shape_cast %49 : vector<8x1xf32> to vector<1x8x1xf32>
    %cst_14 = arith.constant dense<0.000000e+00> : vector<1xf32>
    %51 = vector.multi_reduction <add>, %50, %cst_14 [1, 2] : vector<1x8x1xf32> to vector<1xf32>
    %52 = vector.shape_cast %51 : vector<1xf32> to vector<1x1x1xf32>
    %53 = vector.extract %52[0, 0, 0] : f32 from vector<1x1x1xf32>
    %54 = arith.addf %31, %53 : f32
    %c0_15 = arith.constant 0 : index
    %c0_16 = arith.constant 0 : index
    %55 = vector.load %arg2[%c0_15, %c0_16] : memref<8x16xf32, #tpu.memory_space<vmem>>, vector<8x16xf32>
    %56 = arith.mulf %55, %55 : vector<8x16xf32>
    %cst_17 = arith.constant dense<0.000000e+00> : vector<8xf32>
    %57 = vector.multi_reduction <add>, %56, %cst_17 [1] : vector<8x16xf32> to vector<8xf32>
    %58 = vector.shape_cast %57 : vector<8xf32> to vector<8x1xf32>
    %c0_18 = arith.constant 0 : index
    %c0_19 = arith.constant 0 : index
    %59 = vector.load %arg7[%c0_18, %c0_19] : memref<16x10xf32, #tpu.memory_space<vmem>>, vector<16x10xf32>
    %cst_20 = arith.constant dense<0.000000e+00> : vector<8x10xf32>
    %60 = tpu.matmul %55, %59, %cst_20 {dimension_numbers = #tpu.dot_dimension_numbers<[1], [0], [0], [1], [0, 0, 1, 1], [], []>} : vector<8x16xf32>, vector<16x10xf32>, vector<8x10xf32> -> vector<8x10xf32>
    %c0_21 = arith.constant 0 : index
    %c0_22 = arith.constant 0 : index
    %61 = vector.load %arg9[%c0_21, %c0_22] : memref<1x10xf32, #tpu.memory_space<vmem>>, vector<1x10xf32>
    %62 = vector.broadcast %58 : vector<8x1xf32> to vector<8x10xf32>
    %63 = vector.broadcast %61 : vector<1x10xf32> to vector<8x10xf32>
    %64 = arith.addf %62, %63 : vector<8x10xf32>
    %cst_23 = arith.constant 2.000000e+00 : f32
    %65 = vector.broadcast %cst_23 : f32 to vector<8x10xf32>
    %66 = arith.mulf %65, %60 : vector<8x10xf32>
    %67 = arith.subf %64, %66 : vector<8x10xf32>
    %68 = arith.mulf %67, %1 : vector<8x10xf32>
    %cst_24 = arith.constant 9.99999996E-13 : f32
    %cst_25 = arith.constant 9.99999995E+11 : f32
    %69 = vector.broadcast %cst_24 : f32 to vector<8x10xf32>
    %70 = arith.maximumf %69, %68 : vector<8x10xf32>
    %71 = vector.broadcast %cst_25 : f32 to vector<8x10xf32>
    %72 = arith.minimumf %71, %70 : vector<8x10xf32>
    %cst_26 = arith.constant dense<0.000000e+00> : vector<8xf32>
    %73 = vector.multi_reduction <add>, %72, %cst_26 [1] : vector<8x10xf32> to vector<8xf32>
    %74 = vector.shape_cast %73 : vector<8xf32> to vector<8x1xf32>
    %75 = arith.mulf %74, %9 : vector<8x1xf32>
    %76 = vector.shape_cast %75 : vector<8x1xf32> to vector<1x8x1xf32>
    %cst_27 = arith.constant dense<0.000000e+00> : vector<1xf32>
    %77 = vector.multi_reduction <add>, %76, %cst_27 [1, 2] : vector<1x8x1xf32> to vector<1xf32>
    %78 = vector.shape_cast %77 : vector<1xf32> to vector<1x1x1xf32>
    %79 = vector.extract %78[0, 0, 0] : f32 from vector<1x1x1xf32>
    %cst_28 = arith.constant 1.000000e-03 : f32
    %80 = arith.mulf %cst_28, %79 : f32
    %81 = arith.addf %54, %80 : f32
    %c0_29 = arith.constant 0 : index
    %c0_30 = arith.constant 0 : index
    %82 = vector.load %arg4[%c0_29, %c0_30] : memref<8x8xf32, #tpu.memory_space<vmem>>, vector<8x8xf32>
    %83 = arith.mulf %82, %82 : vector<8x8xf32>
    %cst_31 = arith.constant dense<0.000000e+00> : vector<8xf32>
    %84 = vector.multi_reduction <add>, %83, %cst_31 [1] : vector<8x8xf32> to vector<8xf32>
    %85 = vector.shape_cast %84 : vector<8xf32> to vector<8x1xf32>
    %c0_32 = arith.constant 0 : index
    %c0_33 = arith.constant 0 : index
    %86 = vector.load %arg8[%c0_32, %c0_33] : memref<8x10xf32, #tpu.memory_space<vmem>>, vector<8x10xf32>
    %cst_34 = arith.constant dense<0.000000e+00> : vector<8x10xf32>
    %87 = tpu.matmul %82, %86, %cst_34 {dimension_numbers = #tpu.dot_dimension_numbers<[1], [0], [0], [1], [0, 0, 1, 1], [], []>} : vector<8x8xf32>, vector<8x10xf32>, vector<8x10xf32> -> vector<8x10xf32>
    %c0_35 = arith.constant 0 : index
    %c0_36 = arith.constant 0 : index
    %88 = vector.load %arg10[%c0_35, %c0_36] : memref<1x10xf32, #tpu.memory_space<vmem>>, vector<1x10xf32>
    %89 = vector.broadcast %85 : vector<8x1xf32> to vector<8x10xf32>
    %90 = vector.broadcast %88 : vector<1x10xf32> to vector<8x10xf32>
    %91 = arith.addf %89, %90 : vector<8x10xf32>
    %cst_37 = arith.constant 2.000000e+00 : f32
    %92 = vector.broadcast %cst_37 : f32 to vector<8x10xf32>
    %93 = arith.mulf %92, %87 : vector<8x10xf32>
    %94 = arith.subf %91, %93 : vector<8x10xf32>
    %95 = arith.mulf %94, %1 : vector<8x10xf32>
    %cst_38 = arith.constant 9.99999996E-13 : f32
    %cst_39 = arith.constant 9.99999995E+11 : f32
    %96 = vector.broadcast %cst_38 : f32 to vector<8x10xf32>
    %97 = arith.maximumf %96, %95 : vector<8x10xf32>
    %98 = vector.broadcast %cst_39 : f32 to vector<8x10xf32>
    %99 = arith.minimumf %98, %97 : vector<8x10xf32>
    %cst_40 = arith.constant dense<0.000000e+00> : vector<8xf32>
    %100 = vector.multi_reduction <add>, %99, %cst_40 [1] : vector<8x10xf32> to vector<8xf32>
    %101 = vector.shape_cast %100 : vector<8xf32> to vector<8x1xf32>
    %102 = arith.mulf %101, %9 : vector<8x1xf32>
    %103 = vector.shape_cast %102 : vector<8x1xf32> to vector<1x8x1xf32>
    %cst_41 = arith.constant dense<0.000000e+00> : vector<1xf32>
    %104 = vector.multi_reduction <add>, %103, %cst_41 [1, 2] : vector<1x8x1xf32> to vector<1xf32>
    %105 = vector.shape_cast %104 : vector<1xf32> to vector<1x1x1xf32>
    %106 = vector.extract %105[0, 0, 0] : f32 from vector<1x1x1xf32>
    %cst_42 = arith.constant 1.000000e-03 : f32
    %107 = arith.mulf %cst_42, %106 : f32
    %108 = arith.addf %81, %107 : f32
    %c0_i32 = arith.constant 0 : i32
    %109 = arith.cmpi eq, %arg0, %c0_i32 : i32
    %110 = arith.extui %109 : i1 to i32
    %c0_i32_43 = arith.constant 0 : i32
    %111 = arith.cmpi ne, %110, %c0_i32_43 : i32
    scf.if %111 {
      %cst_48 = arith.constant 0.000000e+00 : f32
      %c0_49 = arith.constant 0 : index
      %118 = memref.load %arg12[%c0_49] : memref<1xf32, #tpu.memory_space<smem>>
      memref.store %cst_48, %arg12[%c0_49] : memref<1xf32, #tpu.memory_space<smem>>
    } else {
    }
    %c0_44 = arith.constant 0 : index
    %112 = memref.load %arg12[%c0_44] : memref<1xf32, #tpu.memory_space<smem>>
    %113 = arith.addf %112, %108 : f32
    %c0_45 = arith.constant 0 : index
    %114 = memref.load %arg12[%c0_45] : memref<1xf32, #tpu.memory_space<smem>>
    memref.store %113, %arg12[%c0_45] : memref<1xf32, #tpu.memory_space<smem>>
    %c0_i32_46 = arith.constant 0 : i32
    %115 = arith.cmpi eq, %arg0, %c0_i32_46 : i32
    %116 = arith.extui %115 : i1 to i32
    %c0_i32_47 = arith.constant 0 : i32
    %117 = arith.cmpi ne, %116, %c0_i32_47 : i32
    scf.if %117 {
      %c0_48 = arith.constant 0 : index
      %118 = memref.load %arg12[%c0_48] : memref<1xf32, #tpu.memory_space<smem>>
      %119 = arith.sitofp %0 : i32 to f32
      %120 = arith.divf %118, %119 : f32
      %c0_49 = arith.constant 0 : index
      %121 = memref.load %arg11[%c0_49] : memref<1xf32, #tpu.memory_space<smem>>
      memref.store %120, %arg11[%c0_49] : memref<1xf32, #tpu.memory_space<smem>>
    } else {
    }
    return
  }
  func.func @transform_0(%arg0: i32, %arg1: memref<1xi32, #tpu.memory_space<smem>>) -> (i32, i32) {
    %c0_i32 = arith.constant 0 : i32
    %c0_i32_0 = arith.constant 0 : i32
    return %arg0, %c0_i32 : i32, i32
  }
  func.func @transform_1(%arg0: i32, %arg1: memref<1xi32, #tpu.memory_space<smem>>) -> (i32, i32) {
    %c0_i32 = arith.constant 0 : i32
    %c0_i32_0 = arith.constant 0 : i32
    return %arg0, %c0_i32 : i32, i32
  }
  func.func @transform_2(%arg0: i32, %arg1: memref<1xi32, #tpu.memory_space<smem>>) -> (i32, i32) {
    %c0_i32 = arith.constant 0 : i32
    %c0_i32_0 = arith.constant 0 : i32
    return %arg0, %c0_i32 : i32, i32
  }
  func.func @transform_3(%arg0: i32, %arg1: memref<1xi32, #tpu.memory_space<smem>>) -> (i32, i32) {
    %c0_i32 = arith.constant 0 : i32
    %c0_i32_0 = arith.constant 0 : i32
    return %arg0, %c0_i32 : i32, i32
  }
  func.func @transform_4(%arg0: i32, %arg1: memref<1xi32, #tpu.memory_space<smem>>) -> (i32, i32) {
    %c0_i32 = arith.constant 0 : i32
    %c0_i32_0 = arith.constant 0 : i32
    return %arg0, %c0_i32 : i32, i32
  }
  func.func @transform_5(%arg0: i32, %arg1: memref<1xi32, #tpu.memory_space<smem>>) -> (i32, i32) {
    %c0_i32 = arith.constant 0 : i32
    %c0_i32_0 = arith.constant 0 : i32
    %c0_i32_1 = arith.constant 0 : i32
    return %c0_i32, %c0_i32_0 : i32, i32
  }
  func.func @transform_6(%arg0: i32, %arg1: memref<1xi32, #tpu.memory_space<smem>>) -> (i32, i32) {
    %c0_i32 = arith.constant 0 : i32
    %c0_i32_0 = arith.constant 0 : i32
    %c0_i32_1 = arith.constant 0 : i32
    return %c0_i32, %c0_i32_0 : i32, i32
  }
  func.func @transform_7(%arg0: i32, %arg1: memref<1xi32, #tpu.memory_space<smem>>) -> (i32, i32) {
    %c0_i32 = arith.constant 0 : i32
    %c0_i32_0 = arith.constant 0 : i32
    %c0_i32_1 = arith.constant 0 : i32
    return %c0_i32, %c0_i32_0 : i32, i32
  }
  func.func @transform_8(%arg0: i32, %arg1: memref<1xi32, #tpu.memory_space<smem>>) -> (i32, i32) {
    %c0_i32 = arith.constant 0 : i32
    %c0_i32_0 = arith.constant 0 : i32
    %c0_i32_1 = arith.constant 0 : i32
    return %c0_i32, %c0_i32_0 : i32, i32
  }
  func.func @transform_9(%arg0: i32, %arg1: memref<1xi32, #tpu.memory_space<smem>>) -> i32 {
    %c0_i32 = arith.constant 0 : i32
    %c0_i32_0 = arith.constant 0 : i32
    return %c0_i32 : i32
  }
}

</mosaic_0001>

<bundles_post_ra>
// kernel: tpu_custom_call.1
= control target key start
LH: loop header
LB: loop body
LE: loop exit
PB: predicated region body
PF: predicated region fallthrough
CT: control target
= control target key end

     0   :  { %16 = vsyncpa [#allocation6], 0  ;;  %s780_s0 = inlined_call_operand.<no memory space> [shape: s32[1], index: 0, kind: input, shape index: {}]   ;;  %s781_s1 = inlined_call_operand.hbm [shape: f32[8,16], index: 1, kind: input, shape index: {}]   ;;  %s782_s2 = inlined_call_operand.hbm [shape: f32[8,10], index: 2, kind: input, shape index: {}]   ;;  %s783_s3 = inlined_call_operand.hbm [shape: f32[8,8], index: 3, kind: input, shape index: {}]   ;;  %s784_s4 = inlined_call_operand.hbm [shape: f32[8,10], index: 4, kind: input, shape index: {}]   ;;  %s785_s5 = inlined_call_operand.hbm [shape: f32[8,10], index: 5, kind: input, shape index: {}]   ;;  %s786_s6 = inlined_call_operand.vmem [shape: f32[16,10], index: 6, kind: input, shape index: {}]   ;;  %s787_s7 = inlined_call_operand.vmem [shape: f32[8,10], index: 7, kind: input, shape index: {}]   ;;  %s788_s8 = inlined_call_operand.vmem [shape: f32[1,10], index: 8, kind: input, shape index: {}]   ;;  %s789_s9 = inlined_call_operand.vmem [shape: f32[1,10], index: 9, kind: input, shape index: {}]   ;;  %s790_s10 = inlined_call_operand.hbm [shape: f32[1], index: 10, kind: output, shape index: {}]  }
   0x1   :  { %17 = vsyncpa [#allocation9], 0 }
   0x2   :  { %18 = vsyncpa [#allocation12], 0 }
   0x3   :  { %19 = vsyncpa [#allocation7], 0  ;;  %s608_s13 = smov [#allocation8]   ;;  %s609_s15 = smov [#allocation11]  }
   0x4   :  { %s36_s14 = sshll.u32 %s608_s13, 4  ;;  %s56_s16 = sshll.u32 %s609_s15, 4  ;;  %s37_s14 = int_to_ptr.vmem [resolvable:$true] %s36_s14  ;;  %s57_s16 = int_to_ptr.vmem [resolvable:$true] %s56_s16 }
   0x5   :  { %s480_s19 = scalar_lea.hbm %s782_s2, 128 }
   0x6   :  { %p481_p0 = scmp.ne.s32.totalorder %s782_s2, %s480_s19  ;;  %p484_p1 = scmp.lt.u32.totalorder %s480_s19, %s782_s2 }
   0x8   :  { %p486_p2 = pnand %p484_p1, %p481_p0 }
   0xa   :  { %489 = shalt.err (!%p486_p2)
}
   0xb   :  { %s490_s24 = scalar_lea.vmem %s37_s14, 128  ;;  %p495_p4 = scmp.lt.s32.totalorder %s37_s14, %s37_s14 }
   0xc   :  { %p491_p3 = scmp.ne.s32.totalorder %s37_s14, %s490_s24  ;;  %p496_p5 = scmp.lt.s32.totalorder %s490_s24, %s490_s24 }
   0xe   :  { %p497_p6 = por %p496_p5, %p495_p4 }
  0x10   :  { %p498_p7 = pnand %p497_p6, %p491_p3 }
  0x12   :  { %501 = shalt.err (!%p498_p7)
}
  0x13   :  { %39 = dma.hbm_to_vmem [thread:$0]  %s782_s2, 128, %s37_s14, [#allocation9]  }
  0x14   :  { %s502_s29 = scalar_lea.hbm %s784_s4, 128 }
  0x15   :  { %p503_p8 = scmp.ne.s32.totalorder %s784_s4, %s502_s29  ;;  %p506_p9 = scmp.lt.u32.totalorder %s502_s29, %s784_s4 }
  0x17   :  { %p508_p10 = pnand %p506_p9, %p503_p8 }
  0x19   :  { %511 = shalt.err (!%p508_p10)
}
  0x1a   :  { %s512_s15 = scalar_lea.vmem %s57_s16, 128  ;;  %p517_p12 = scmp.lt.s32.totalorder %s57_s16, %s57_s16 }
  0x1b   :  { %p513_p11 = scmp.ne.s32.totalorder %s57_s16, %s512_s15  ;;  %p518_p13 = scmp.lt.s32.totalorder %s512_s15, %s512_s15 }
  0x1d   :  { %p519_p0 = por %p518_p13, %p517_p12 }
  0x1f   :  { %p520_p1 = pnand %p519_p0, %p513_p11 }
  0x21   :  { %523 = shalt.err (!%p520_p1)
}
  0x22   :  { %59 = dma.hbm_to_vmem [thread:$0]  %s784_s4, 128, %s57_s16, [#allocation12]  }
  0x23   :  { %s610_s17 = smov [#allocation5]   ;;  %s611_s19 = smov [#allocation10]  }
  0x24   :  { %s26_s18 = sshll.u32 %s610_s17, 4  ;;  %s46_s20 = sshll.u32 %s611_s19, 4  ;;  %s27_s18 = int_to_ptr.vmem [resolvable:$true] %s26_s18  ;;  %s47_s20 = int_to_ptr.vmem [resolvable:$true] %s46_s20 }
  0x25   :  { %s524_s23 = scalar_lea.hbm %s781_s1, 128 }
  0x26   :  { %p525_p2 = scmp.ne.s32.totalorder %s781_s1, %s524_s23  ;;  %p528_p3 = scmp.lt.u32.totalorder %s524_s23, %s781_s1 }
  0x28   :  { %p530_p4 = pnand %p528_p3, %p525_p2 }
  0x2a   :  { %533 = shalt.err (!%p530_p4)
}
  0x2b   :  { %s534_s4 = scalar_lea.vmem %s27_s18, 128  ;;  %p539_p6 = scmp.lt.s32.totalorder %s27_s18, %s27_s18 }
  0x2c   :  { %p535_p5 = scmp.ne.s32.totalorder %s27_s18, %s534_s4  ;;  %p540_p7 = scmp.lt.s32.totalorder %s534_s4, %s534_s4 }
  0x2e   :  { %p541_p8 = por %p540_p7, %p539_p6 }
  0x30   :  { %p542_p9 = pnand %p541_p8, %p535_p5 }
  0x32   :  { %545 = shalt.err (!%p542_p9)
}
  0x33   :  { %29 = dma.hbm_to_vmem [thread:$0]  %s781_s1, 128, %s27_s18, [#allocation6]  }
  0x34   :  { %s546_s11 = scalar_lea.hbm %s783_s3, 128 }
  0x35   :  { %p547_p10 = scmp.ne.s32.totalorder %s783_s3, %s546_s11  ;;  %p550_p11 = scmp.lt.u32.totalorder %s546_s11, %s783_s3 }
  0x37   :  { %p552_p12 = pnand %p550_p11, %p547_p10 }
  0x39   :  { %555 = shalt.err (!%p552_p12)
}
  0x3a   :  { %s556_s14 = scalar_lea.vmem %s47_s20, 128  ;;  %p561_p0 = scmp.lt.s32.totalorder %s47_s20, %s47_s20 }
  0x3b   :  { %p557_p13 = scmp.ne.s32.totalorder %s47_s20, %s556_s14  ;;  %p562_p1 = scmp.lt.s32.totalorder %s556_s14, %s556_s14 }
  0x3d   :  { %p563_p2 = por %p562_p1, %p561_p0 }
  0x3f   :  { %p564_p3 = pnand %p563_p2, %p557_p13 }
  0x41   :  { %567 = shalt.err (!%p564_p3)
}
  0x42   :  { %49 = dma.hbm_to_vmem [thread:$0]  %s783_s3, 128, %s47_s20, [#allocation9]  }
  0x43   :  { %s612_s18 = smov [#allocation13]   ;;  %s568_s23 = scalar_lea.hbm %s785_s5, 128 }
  0x44   :  { %s66_s19 = sshll.u32 %s612_s18, 4  ;;  %p569_p4 = scmp.ne.s32.totalorder %s785_s5, %s568_s23  ;;  %s67_s19 = int_to_ptr.vmem [resolvable:$true] %s66_s19 }
  0x45   :  { %p572_p5 = scmp.lt.u32.totalorder %s568_s23, %s785_s5 }
  0x47   :  { %p574_p6 = pnand %p572_p5, %p569_p4 }
  0x49   :  { %577 = shalt.err (!%p574_p6)
}
  0x4a   :  { %s578_s4 = scalar_lea.vmem %s67_s19, 128  ;;  %p583_p8 = scmp.lt.s32.totalorder %s67_s19, %s67_s19 }
  0x4b   :  { %p579_p7 = scmp.ne.s32.totalorder %s67_s19, %s578_s4  ;;  %p584_p9 = scmp.lt.s32.totalorder %s578_s4, %s578_s4 }
  0x4d   :  { %p585_p10 = por %p584_p9, %p583_p8 }
  0x4f   :  { %p586_p11 = pnand %p585_p10, %p579_p7 }
  0x51   :  { %589 = shalt.err (!%p586_p11)
}
  0x52   :  { %69 = dma.hbm_to_vmem [thread:$0]  %s785_s5, 128, %s67_s19, [#allocation12]  }
  0x53   :  { %600 = dma.done.wait [#allocation6], 128  }
  0x54   :  { %601 = vsyncadd [#allocation6], 4294967168 }
  0x55   :  { %602 = dma.done.wait [#allocation9], 256  }
  0x56   :  { %603 = vsyncadd [#allocation9], 4294967040 }
  0x57   :  { %604 = dma.done.wait [#allocation12], 256  }
  0x58   :  { %605 = vsyncadd [#allocation12], 4294967040  ;;  %v613_v0 = vmov 0.0   ;;  %vm614_vm0 = vmmov 0   ;;  %v615_v1 = vmov 0.0|0.0   ;;  %vm105_vm1 = vcmask 80896   ;;  %s403_s14 = scvt.s32.f32 %s780_s0 }
  0x59   :  { %443 = vmatprep.subr.mxu1 %v613_v0  ;;  %445 = vmatprep.mubr.msk.f32.mxu1 %vm614_vm0, %v613_v0  ;;  %vm282_vm2 = vcmask 64512   ;;  %v286_v2 = vld [vmem:[%s787_s7] sm:$0xff]  ;;  %v280_v3 = vld [vmem:[#allocation10] sm:$0xff]  ;;  %v104_v4 = vld [vmem:[#allocation8] sm:$0xff]  ;;  %vm172_vm3 = vcmask 130048   ;;  %v96_v56 = vlaneseq  ;;  %v100_v59 = vstv %s780_s0  ;;  %s590_s3 = scalar_lea.hbm %s790_s10, 16 }
  0x5a   :  { %448 = vmatprep.subr.bf16.mxu0 %v615_v1  ;;  %440 = vmatprep.mubr.msk.f32.mxu0 %vm614_vm0, %v613_v0  ;;  %v106_v5 = vsel %vm105_vm1, %v104_v4, -inf  ;;  %v176_v6 = vld [vmem:[%s786_s6] sm:$0xff]  ;;  %v177_v7 = vld [vmem:[%s786_s6 + $0x8] sm:$0xff]  ;;  %v139_v10 = vld [vmem:[#allocation11] sm:$0xff]  ;;  %v281_v12 = vmul.f32 %v280_v3, %v280_v3  ;;  %vm128_vm5 = vcmask 7168   ;;  %p591_p12 = scmp.ne.s32.totalorder %s790_s10, %s590_s3  ;;  %p594_p13 = scmp.lt.u32.totalorder %s590_s3, %s790_s10 }
  0x5b   :  { %444 = vmatpush3.msra.mxu1 %v286_v2  ;;  %v170_v8 = vld [vmem:[#allocation5] sm:$0xff]  ;;  %107 = vmax.xlane.f32.xlu0 %v106_v5  ;;  %v449_v9 = vpack.c.bf16 %v177_v7, %v176_v6  ;;  %v140_v13 = vsel %vm105_vm1, %v139_v10, -inf  ;;  %v97_v57 = vshrl.u32 %v96_v56, 7 }
  0x5c   :  { %446 = vmatmul.mubr.msk.f32.vlgmr.msra.gmra.mrb[0].mxu1 %vm282_vm2, %v280_v3  ;;  %v171_v11 = vmul.f32 %v170_v8, %v170_v8  ;;  %v283_v15 = vsel %vm282_vm2, %v281_v12, 0.0  ;;  %v94_v23 = vld [vmem:[#allocation13] sm:$0xff]  ;;  %p596_p0 = pnand %p594_p13, %p591_p12 }
  0x5d   :  { %450 = vmatpush3.bf16.msra.mxu0 %v449_v9  ;;  %v117_v25 = vsel %vm105_vm1, %v94_v23, 0.0  ;;  %v120_v26 = vmul.f32 %v104_v4, %v94_v23  ;;  %v151_v27 = vmul.f32 %v139_v10, %v94_v23  ;;  %v430_v33 = vld [vmem:[%s789_s9] ss:$0 sm:$0xff]  ;;  %vm101_vm4 = vcmp.lt.s32.totalorder %v97_v57, %v100_v59 }
  0x5e   :  { %v173_v14 = vsel %vm172_vm3, %v171_v11, 0.0  ;;  %v428_v39 = vld [vmem:[%s788_s8] ss:$0 sm:$0xff] }
  0x5f   :  { %174 = vadd.xlane.f32.xlu1 %v173_v14  ;;  %141 = vmax.xlane.f32.xlu0 %v140_v13  ;;  %v121_v30 = vsel %vm105_vm1, %v120_v26, 0.0  ;;  %v152_v31 = vsel %vm105_vm1, %v151_v27, 0.0 }
  0x60   :  { %441 = vmatmul.mubr.msk.f32.vlgmr.msra.gmra.mrb[0].mxu0 %vm172_vm3, %v170_v8 }
  0x63   :  { %284 = vadd.xlane.f32.xlu1 %v283_v15 }
  0xe8   :  { %v108_v16 = vpop.xlane.xlu0 %107 }
  0xe9   :  { %v109_v17 = vsub.f32 %v104_v4, %v108_v16  ;;  %v426_v4 = vsel %vm101_vm4, 1.0, %v613_v0 }
  0xeb   :  { %v110_v18 = vmul.f32 1.442695, %v109_v17 }
  0xec   :  { %v142_v19 = vpop.xlane.xlu0 %141  ;;  %v175_v32 = vpop.xlane.xlu1 %174 }
  0xed   :  { %470 = vpow2.f32 %v110_v18  ;;  %v143_v20 = vsub.f32 %v139_v10, %v142_v19  ;;  %v258_v43 = vadd.f32 %v428_v39, %v175_v32 }
  0xef   :  { %v144_v21 = vmul.f32 1.442695, %v143_v20 }
  0xf0   :  { %v285_v34 = vpop.xlane.xlu1 %284 }
  0xf1   :  { %472 = vpow2.f32 %v144_v21  ;;  %v367_v35 = vadd.f32 %v430_v33, %v285_v34 }
  0xf7   :  { %v471_v22 = vpop.eup %470 }
  0xf8   :  { %v112_v24 = vsel %vm105_vm1, %v471_v22, 0.0 }
  0xf9   :  { %113 = vadd.xlane.f32.xlu0 %v112_v24 }
  0xfb   :  { %v473_v28 = vpop.eup %472 }
  0xfc   :  { %v146_v29 = vsel %vm105_vm1, %v473_v28, 0.0 }
  0xfd   :  { %147 = vadd.xlane.f32.xlu1 %v146_v29  ;;  %118 = vadd.xlane.f32.xlu0 %v117_v25 }
 0x101   :  { %122 = vadd.xlane.f32.xlu1 %v121_v30  ;;  %153 = vadd.xlane.f32.xlu0 %v152_v31 }
 0x12f   :  { %v356_v36 = vpop.f32.mrb[0].mxu1 }
 0x130   :  { %v368_v37 = vmul.f32 2.0, %v356_v36  ;;  %v447_v38 = vpop.f32.mrb[1].mxu1  ;;  %v404_v36 = vstv %s403_s14 }
 0x132   :  { %v369_v40 = vsub.f32 %v367_v35, %v368_v37 }
 0x133   :  { %v247_v41 = vpop.f32.mrb[0].mxu0 }
 0x134   :  { %v370_v42 = vmul.f32 %v369_v40, %v94_v23  ;;  %v259_v44 = vmul.f32 2.0, %v247_v41  ;;  %v442_v45 = vpop.f32.mrb[1].mxu0 }
 0x136   :  { %v371_v46 = vmax.f32 %v370_v42, 1e-12  ;;  %v260_v47 = vsub.f32 %v258_v43, %v259_v44 }
 0x138   :  { %v372_v48 = vmin.f32 %v371_v46, 1e+12  ;;  %v261_v49 = vmul.f32 %v260_v47, %v94_v23 }
 0x13a   :  { %v373_v50 = vsel %vm105_vm1, %v372_v48, 0.0  ;;  %v262_v51 = vmax.f32 %v261_v49, 1e-12 }
 0x13b   :  { %374 = vadd.xlane.f32.xlu0 %v373_v50 }
 0x13c   :  { %v263_v52 = vmin.f32 %v262_v51, 1e+12 }
 0x13e   :  { %v264_v53 = vsel %vm105_vm1, %v263_v52, 0.0 }
 0x13f   :  { %265 = vadd.xlane.f32.xlu1 %v264_v53 }
 0x186   :  { %v114_v54 = vpop.xlane.xlu0 %113 }
 0x187   :  { %474 = vlog2.f32 %v114_v54 }
 0x18a   :  { %v148_v55 = vpop.xlane.xlu1 %147  ;;  %v119_v61 = vpop.xlane.xlu0 %118 }
 0x18b   :  { %476 = vlog2.f32 %v148_v55 }
 0x18c   :  { %478 = vrcp.f32 %v404_v36 }
 0x18e   :  { %v123_v1 = vpop.xlane.xlu1 %122  ;;  %v154_v7 = vpop.xlane.xlu0 %153 }
 0x191   :  { %v475_v58 = vpop.eup %474 }
 0x192   :  { %v116_v60 = vmul.f32 0.6931472, %v475_v58 }
 0x194   :  { %v124_v62 = vadd.f32 %v116_v60, %v108_v16 }
 0x195   :  { %v477_v63 = vpop.eup %476 }
 0x196   :  { %v150_v2 = vmul.f32 0.6931472, %v477_v63  ;;  %v125_v3 = vmul.f32 %v124_v62, %v119_v61  ;;  %v479_v47 = vpop.eup %478 }
 0x198   :  { %v155_v5 = vadd.f32 %v150_v2, %v142_v19  ;;  %v126_v6 = vsub.f32 %v125_v3, %v123_v1 }
 0x19a   :  { %v156_v8 = vmul.f32 %v155_v5, %v119_v61  ;;  %v127_v9 = vmul.f32 %v426_v4, %v126_v6 }
 0x19c   :  { %v157_v10 = vsub.f32 %v156_v8, %v154_v7  ;;  %v129_v11 = vsel %vm128_vm5, %v127_v9, 0.0 }
 0x19d   :  { %130 = vadd.xlane.f32.xlu1 %v129_v11 }
 0x19e   :  { %v158_v12 = vmul.f32 %v426_v4, %v157_v10 }
 0x1a0   :  { %v159_v13 = vsel %vm128_vm5, %v158_v12, 0.0 }
 0x1a1   :  { %160 = vadd.xlane.f32.xlu0 %v159_v13 }
 0x1c8   :  { %v375_v14 = vpop.xlane.xlu0 %374 }
 0x1c9   :  { %v376_v15 = vmul.f32 %v426_v4, %v375_v14 }
 0x1cb   :  { %v377_v16 = vsel %vm128_vm5, %v376_v15, 0.0 }
 0x1cc   :  { %378 = vadd.xlane.f32.xlu0 %v377_v16  ;;  %v266_v17 = vpop.xlane.xlu1 %265 }
 0x1cd   :  { %v267_v18 = vmul.f32 %v426_v4, %v266_v17 }
 0x1cf   :  { %v268_v20 = vsel %vm128_vm5, %v267_v18, 0.0 }
 0x1d0   :  { %269 = vadd.xlane.f32.xlu1 %v268_v20 }
 0x22a   :  { %v131_v0 = vpop.xlane.xlu1 %130 }
 0x22b   :  { %v132_v19 = vrot.slane %v131_v0, 4 }
 0x22d   :  { %v133_v21 = vadd.f32 %v132_v19, %v131_v0 }
 0x22e   :  { %v161_v22 = vpop.xlane.xlu0 %160 }
 0x22f   :  { %v134_v23 = vrot.slane %v133_v21, 2  ;;  %v162_v24 = vrot.slane %v161_v22, 4 }
 0x231   :  { %v163_v25 = vadd.f32 %v162_v24, %v161_v22  ;;  %v135_v26 = vadd.f32 %v134_v23, %v133_v21 }
 0x233   :  { %v164_v27 = vrot.slane %v163_v25, 2  ;;  %v136_v28 = vrot.slane %v135_v26, 1 }
 0x235   :  { %v137_v29 = vadd.f32 %v136_v28, %v135_v26  ;;  %v165_v30 = vadd.f32 %v164_v27, %v163_v25 }
 0x237   :  { %451 = vpush %v137_v29  ;;  %v166_v31 = vrot.slane %v165_v30, 1 }
 0x239   :  { %v167_v32 = vadd.f32 %v166_v31, %v165_v30 }
 0x23b   :  { %453 = vpush %v167_v32 }
 0x259   :  { %v379_v33 = vpop.xlane.xlu0 %378 }
 0x25a   :  { %v380_v34 = vrot.slane %v379_v33, 4 }
 0x25c   :  { %v381_v35 = vadd.f32 %v380_v34, %v379_v33 }
 0x25d   :  { %v270_v38 = vpop.xlane.xlu1 %269 }
 0x25e   :  { %v382_v37 = vrot.slane %v381_v35, 2  ;;  %v271_v39 = vrot.slane %v270_v38, 4 }
 0x260   :  { %v272_v40 = vadd.f32 %v271_v39, %v270_v38  ;;  %v383_v41 = vadd.f32 %v382_v37, %v381_v35 }
 0x262   :  { %v273_v42 = vrot.slane %v272_v40, 2  ;;  %v384_v44 = vrot.slane %v383_v41, 1 }
 0x264   :  { %v274_v43 = vadd.f32 %v273_v42, %v272_v40  ;;  %v385_v48 = vadd.f32 %v384_v44, %v383_v41 }
 0x266   :  { %v275_v45 = vrot.slane %v274_v43, 1 }
 0x268   :  { %v276_v46 = vadd.f32 %v275_v45, %v274_v43  ;;  %s452_s0 = spop %451 }
 0x26a   :  { %455 = vpush %v276_v46 }
 0x26b   :  { %457 = vpush %v385_v48 }
 0x26c   :  { %459 = vpush %v479_v47  ;;  %s454_s1 = spop %453 }
 0x26d   :  { %s169_s17 = sadd.f32 %s454_s1, %s452_s0 }
 0x29b   :  { %s456_s18 = spop %455 }
 0x29c   :  { %s278_s19 = smul.f32 0.001, %s456_s18  ;;  %s458_s21 = spop %457 }
 0x29d   :  { %s387_s23 = smul.f32 0.001, %s458_s21  ;;  %s460_s24 = spop %459 }
 0x29e   :  { %s279_s22 = sadd.f32 %s278_s19, %s169_s17 }
 0x2a0   :  { %s388_s25 = sadd.f32 %s387_s23, %s279_s22 }
 0x2a2   :  { %s407_s26 = smul.f32 %s460_s24, %s388_s25 }
 0x2a4   :  { %409 = sst [smem:[#allocation14]] %s407_s26 }
 0x2a5   :  { %599 = shalt.err (!%p596_p0)
}
 0x2a6   :  { %s616_s29 = smov [#allocation14]  }
 0x2a7   :  { %417 = dma.smem_to_hbm %s616_s29, 16, %s790_s10, [#allocation7]  }
 0x2a8   :  { %606 = dma.done.wait [#allocation7], 16  }
 0x2a9   :  { %607 = vsyncadd [#allocation7], 4294967280 }
 0x2aa   :  { %421 = sfence }
 0x2ab   :  { %422 = vsyncpa [#allocation6], 1 }
 0x2ac   :  { %423 = vsyncpa [#allocation9], 1 }
 0x2ad   :  { %424 = vsyncpa [#allocation12], 1 }
 0x2ae   :  { %425 = vsyncpa [#allocation7], 1 }

</bundles_post_ra>
